<compile_context>
chip_gen: v5e
topology: v5e:2x2
jax: 0.10.0
libtpu: 0.0.40
codegen_flags: <defaults>
</compile_context>

<pallas_src>
from functools import partial

import jax
import jax.numpy as jnp
from jax.experimental import pallas as pl
from jax.experimental.pallas import tpu as pltpu

LANES = 128
POOL_K = 31
POOL_PAD = 15


def _structure_loss_kernel(pred_ref, mask_ref, pooled_ref, out_ref, *, hw):
    """Per-(n,c) image partial sums: row 0 = sum(BCE-with-logits), row 1 = sum(weit).

    Input blocks: (1, R, 128) (one flattened image, lane-dense).
    Output block: (1, 2, 128) (scalar broadcast across lanes; wrapper reads lane 0).
    """
    x = pred_ref[...].astype(jnp.float32)     # logits
    t = mask_ref[...].astype(jnp.float32)     # targets
    a = pooled_ref[...].astype(jnp.float32)   # 31x31 mean-pooled mask

    # Numerically stable BCE-with-logits (same formula PyTorch uses):
    #   max(x, 0) - x*t + log(1 + exp(-|x|))
    bce = jnp.maximum(x, 0.0) - x * t + jnp.log(1.0 + jnp.exp(-jnp.abs(x)))

    # structure weighting: 1 + 4 * |avgpool(mask) - mask|
    weit = 1.0 + 4.0 * jnp.abs(a - t)

    _, rows, lanes = x.shape
    if hw != rows * lanes:
        # Ragged tail of the flattened image: mask the zero-padded slots
        # in-kernel (no mask stream from HBM).  Static condition -> this code
        # is only emitted when padding actually exists.
        row = jax.lax.broadcasted_iota(jnp.int32, (1, rows, lanes), 1)
        lane = jax.lax.broadcasted_iota(jnp.int32, (1, rows, lanes), 2)
        valid = (row * lanes + lane) < hw
        bce = jnp.where(valid, bce, 0.0)
        weit = jnp.where(valid, weit, 0.0)

    bce_sum = jnp.sum(bce)
    weit_sum = jnp.sum(weit)

    sel = jax.lax.broadcasted_iota(jnp.int32, (1, 2, LANES), 1)
    out_ref[...] = jnp.where(sel == 0, bce_sum, weit_sum)


def structure_loss1(pred, mask):
    """JAX/Pallas equivalent of tools/loss.py::structure_loss1.forward (NCHW)."""
    assert pred.shape == mask.shape and pred.ndim == 4
    n, c, h, w = pred.shape
    nc, hw = n * c, h * w
    r = pl.cdiv(hw, LANES)
    hw_pad = r * LANES

    # weit's pooling term: 31x31 mean pool, stride 1, pad 15,
    # count_include_pad=True  ->  zero-padded window sum / 961.
    # TODO(synk): the 31x31 pooling stencil is done with lax.reduce_window in
    # the wrapper; only the elementwise math + reductions run in Pallas.
    pooled = jax.lax.reduce_window(
        mask.astype(jnp.float32), 0.0, jax.lax.add,
        window_dimensions=(1, 1, POOL_K, POOL_K),
        window_strides=(1, 1, 1, 1),
        padding=((0, 0), (0, 0), (POOL_PAD, POOL_PAD), (POOL_PAD, POOL_PAD)),
    ) * (1.0 / (POOL_K * POOL_K))

    def to_blocks(x):
        # (N, C, H, W) -> (N*C, R, 128): lane-dense, one image per grid step.
        x = x.reshape(nc, hw)
        if hw_pad != hw:
            x = jnp.pad(x, ((0, 0), (0, hw_pad - hw)))
        return x.reshape(nc, r, LANES)

    in_spec = pl.BlockSpec((1, r, LANES), lambda i: (i, 0, 0))
    sums = pl.pallas_call(
        partial(_structure_loss_kernel, hw=hw),
        out_shape=jax.ShapeDtypeStruct((nc, 2, LANES), jnp.float32),
        grid_spec=pltpu.PrefetchScalarGridSpec(
            num_scalar_prefetch=0,
            grid=(nc,),
            in_specs=[in_spec, in_spec, in_spec],
            out_specs=pl.BlockSpec((1, 2, LANES), lambda i: (i, 0, 0)),
        ),
        compiler_params=pltpu.CompilerParams(
            dimension_semantics=("parallel",),
        ),
    )(to_blocks(pred), to_blocks(mask), to_blocks(pooled))

    bce_sum = sums[:, 0, 0]      # (N*C,)
    weit_sum = sums[:, 1, 0]     # (N*C,)

    # Legacy reduce='none' -> reduction='mean': wbce is the scalar mean BCE.
    wbce = jnp.sum(bce_sum) / (nc * hw)
    # (weit * wbce).sum((2, 3)) / weit.sum((2, 3)), then .mean() over (N, C).
    per_img = (wbce * weit_sum) / weit_sum
    return jnp.mean(per_img)


def _reference_structure_loss1(pred, mask):
    """Pure-JAX mirror of the PyTorch forward (legacy reduce='none' => 'mean')."""
    pooled = jax.lax.reduce_window(
        mask.astype(jnp.float32), 0.0, jax.lax.add,
        window_dimensions=(1, 1, POOL_K, POOL_K),
        window_strides=(1, 1, 1, 1),
        padding=((0, 0), (0, 0), (POOL_PAD, POOL_PAD), (POOL_PAD, POOL_PAD)),
    ) / (POOL_K * POOL_K)
    weit = 1.0 + 4.0 * jnp.abs(pooled - mask.astype(jnp.float32))
    x = pred.astype(jnp.float32)
    t = mask.astype(jnp.float32)
    bce = jnp.maximum(x, 0.0) - x * t + jnp.log1p(jnp.exp(-jnp.abs(x)))
    wbce = jnp.mean(bce)                       # scalar, per legacy reduce='none'
    per_img = (weit * wbce).sum(axis=(2, 3)) / weit.sum(axis=(2, 3))
    return jnp.mean(per_img)


if __name__ == "__main__":
    key = jax.random.PRNGKey(0)
    k1, k2 = jax.random.split(key)
    # NCHW, as the PyTorch module would see from a segmentation head.
    pred = jax.random.normal(k1, (2, 4, 16, 16), dtype=jnp.float32)
    mask = (jax.random.uniform(k2, (2, 4, 16, 16)) > 0.5).astype(jnp.float32)

    loss = structure_loss1(pred, mask)
    jax.block_until_ready(loss)

    ref = _reference_structure_loss1(pred, mask)
    assert jnp.allclose(loss, ref, atol=1e-5, rtol=1e-5), (loss, ref)
    print("KERNEL_OK")
</pallas_src>

<mosaic_0001>
module attributes {stable_mosaic.version = 11 : i64} {
  func.func @_structure_loss_kernel(%arg0: i32, %arg1: memref<1x2x128xf32, #tpu.memory_space<vmem>>, %arg2: memref<1x2x128xf32, #tpu.memory_space<vmem>>, %arg3: memref<1x2x128xf32, #tpu.memory_space<vmem>>, %arg4: memref<1x2x128xf32, #tpu.memory_space<vmem>>) attributes {dimension_semantics = [#tpu.dimension_semantics<parallel>], iteration_bounds = array<i64: 8>, scalar_prefetch = 0 : i64, scratch_operands = 0 : i64, tpu.core_type = #tpu.core_type<tc>, window_params = [{transform_indices = @transform_0, window_bounds = array<i64: 1, 2, 128>}, {transform_indices = @transform_1, window_bounds = array<i64: 1, 2, 128>}, {transform_indices = @transform_2, window_bounds = array<i64: 1, 2, 128>}, {transform_indices = @transform_3, window_bounds = array<i64: 1, 2, 128>}]} {
    %c0 = arith.constant 0 : index
    %c0_0 = arith.constant 0 : index
    %c0_1 = arith.constant 0 : index
    %0 = vector.load %arg1[%c0, %c0_0, %c0_1] : memref<1x2x128xf32, #tpu.memory_space<vmem>>, vector<1x2x128xf32>
    %c0_2 = arith.constant 0 : index
    %c0_3 = arith.constant 0 : index
    %c0_4 = arith.constant 0 : index
    %1 = vector.load %arg2[%c0_2, %c0_3, %c0_4] : memref<1x2x128xf32, #tpu.memory_space<vmem>>, vector<1x2x128xf32>
    %c0_5 = arith.constant 0 : index
    %c0_6 = arith.constant 0 : index
    %c0_7 = arith.constant 0 : index
    %2 = vector.load %arg3[%c0_5, %c0_6, %c0_7] : memref<1x2x128xf32, #tpu.memory_space<vmem>>, vector<1x2x128xf32>
    %cst = arith.constant 0.000000e+00 : f32
    %3 = vector.broadcast %cst : f32 to vector<1x2x128xf32>
    %4 = arith.maximumf %0, %3 : vector<1x2x128xf32>
    %5 = arith.mulf %0, %1 : vector<1x2x128xf32>
    %6 = arith.subf %4, %5 : vector<1x2x128xf32>
    %7 = math.absf %0 : vector<1x2x128xf32>
    %cst_8 = arith.constant 0.000000e+00 : f32
    %8 = vector.broadcast %cst_8 : f32 to vector<1x2x128xf32>
    %9 = arith.subf %8, %7 : vector<1x2x128xf32>
    %10 = math.exp %9 : vector<1x2x128xf32>
    %cst_9 = arith.constant 1.000000e+00 : f32
    %11 = vector.broadcast %cst_9 : f32 to vector<1x2x128xf32>
    %12 = arith.addf %11, %10 : vector<1x2x128xf32>
    %13 = math.log %12 : vector<1x2x128xf32>
    %14 = arith.addf %6, %13 : vector<1x2x128xf32>
    %15 = arith.subf %2, %1 : vector<1x2x128xf32>
    %16 = math.absf %15 : vector<1x2x128xf32>
    %cst_10 = arith.constant 4.000000e+00 : f32
    %17 = vector.broadcast %cst_10 : f32 to vector<1x2x128xf32>
    %18 = arith.mulf %17, %16 : vector<1x2x128xf32>
    %cst_11 = arith.constant 1.000000e+00 : f32
    %19 = vector.broadcast %cst_11 : f32 to vector<1x2x128xf32>
    %20 = arith.addf %19, %18 : vector<1x2x128xf32>
    %21 = vector.shape_cast %14 : vector<1x2x128xf32> to vector<1x1x2x128xf32>
    %cst_12 = arith.constant dense<0.000000e+00> : vector<1xf32>
    %22 = vector.multi_reduction <add>, %21, %cst_12 [1, 2, 3] : vector<1x1x2x128xf32> to vector<1xf32>
    %23 = vector.shape_cast %22 : vector<1xf32> to vector<1x1x1x1xf32>
    %24 = vector.extract %23[0, 0, 0, 0] : f32 from vector<1x1x1x1xf32>
    %25 = vector.shape_cast %20 : vector<1x2x128xf32> to vector<1x1x2x128xf32>
    %cst_13 = arith.constant dense<0.000000e+00> : vector<1xf32>
    %26 = vector.multi_reduction <add>, %25, %cst_13 [1, 2, 3] : vector<1x1x2x128xf32> to vector<1xf32>
    %27 = vector.shape_cast %26 : vector<1xf32> to vector<1x1x1x1xf32>
    %28 = vector.extract %27[0, 0, 0, 0] : f32 from vector<1x1x1x1xf32>
    %29 = tpu.iota {dimensions = array<i32: 1>} : vector<1x2x128xi32>
    %c0_i32 = arith.constant 0 : i32
    %30 = vector.broadcast %c0_i32 : i32 to vector<1x2x128xi32>
    %31 = arith.cmpi eq, %29, %30 : vector<1x2x128xi32>
    %32 = vector.broadcast %24 : f32 to vector<1x2x128xf32>
    %33 = vector.broadcast %28 : f32 to vector<1x2x128xf32>
    %34 = arith.select %31, %32, %33 : vector<1x2x128xi1>, vector<1x2x128xf32>
    %c0_14 = arith.constant 0 : index
    %c0_15 = arith.constant 0 : index
    %c0_16 = arith.constant 0 : index
    %35 = vector.load %arg4[%c0_14, %c0_15, %c0_16] : memref<1x2x128xf32, #tpu.memory_space<vmem>>, vector<1x2x128xf32>
    tpu.vector_store %arg4[%c0_14, %c0_15, %c0_16], %34 {strides = array<i32>} : memref<1x2x128xf32, #tpu.memory_space<vmem>>, vector<1x2x128xf32>,
    return
  }
  func.func @transform_0(%arg0: i32) -> (i32, i32, i32) {
    %c0_i32 = arith.constant 0 : i32
    %c0_i32_0 = arith.constant 0 : i32
    %c0_i32_1 = arith.constant 0 : i32
    return %arg0, %c0_i32, %c0_i32_0 : i32, i32, i32
  }
  func.func @transform_1(%arg0: i32) -> (i32, i32, i32) {
    %c0_i32 = arith.constant 0 : i32
    %c0_i32_0 = arith.constant 0 : i32
    %c0_i32_1 = arith.constant 0 : i32
    return %arg0, %c0_i32, %c0_i32_0 : i32, i32, i32
  }
  func.func @transform_2(%arg0: i32) -> (i32, i32, i32) {
    %c0_i32 = arith.constant 0 : i32
    %c0_i32_0 = arith.constant 0 : i32
    %c0_i32_1 = arith.constant 0 : i32
    return %arg0, %c0_i32, %c0_i32_0 : i32, i32, i32
  }
  func.func @transform_3(%arg0: i32) -> (i32, i32, i32) {
    %c0_i32 = arith.constant 0 : i32
    %c0_i32_0 = arith.constant 0 : i32
    %c0_i32_1 = arith.constant 0 : i32
    return %arg0, %c0_i32, %c0_i32_0 : i32, i32, i32
  }
}

</mosaic_0001>

<bundles_post_ra>
// kernel: tpu_custom_call.1
= control target key start
LH: loop header
LB: loop body
LE: loop exit
PB: predicated region body
PF: predicated region fallthrough
CT: control target
= control target key end

     0   :  { %s886_s0 = inlined_call_operand.hbm [shape: f32[8,2,128], index: 0, kind: input, shape index: {}]   ;;  %s887_s1 = inlined_call_operand.hbm [shape: f32[8,2,128], index: 1, kind: input, shape index: {}]   ;;  %s888_s2 = inlined_call_operand.hbm [shape: f32[8,2,128], index: 2, kind: input, shape index: {}]   ;;  %s889_s3 = inlined_call_operand.hbm [shape: f32[8,2,128], index: 3, kind: output, shape index: {}]  }
   0x1   :  { %890 = sst [smem:[#allocation13_spill]] %s887_s1 }
   0x2   :  { %8 = vsyncpa [#allocation3], 0 }
   0x3   :  { %10 = vsyncpa [#allocation3 + $0x1], 0 }
   0x4   :  { %11 = vsyncpa [#allocation6], 0 }
   0x5   :  { %13 = vsyncpa [#allocation6 + $0x1], 0 }
   0x6   :  { %14 = vsyncpa [#allocation4], 0 }
   0x7   :  { %16 = vsyncpa [#allocation4 + $0x1], 0  ;;  %s702_s12 = smov 0   ;;  %s704_s13 = smov 0  }
   0x8   :  { %s706_s14 = smov 0   ;;  %s708_s15 = smov 0  }
   0x9 LB: > { %s723_s16 = sadd.s32 4294967295, %s680_s15   ;;  %s438_s17 = sadd.s32 4294967294, %s680_s15   ;;  %s680_s15 = sphi %s708_s15, %s902_s15   ;;  %s676_s14 = sphi %s706_s14, %s901_s14   ;;  %s672_s13 = sphi %s704_s13, %s900_s13   ;;  %s668_s12 = sphi %s702_s12, %s899_s12  }
   0xa   : > { %s727_s18 = sadd.s32 1, %s680_s15   ;;  %s29_s19 = sadd.s32 1, %s676_s14 }
   0xb   : > { %s26_s20 = ssub.s32 %s680_s15, %s727_s18  ;;  %p36_p0 = scmp.ne.s32.totalorder %s676_s14, %s672_s13 }
   0xc   : > { %p27_p1 = scmp.eq.s32.totalorder %s26_s20, 0  ;;  %p37_p2 = scmp.eq.s32.totalorder %s680_s15, 0 }
   0xd   : > { %p42_p3 = scmp.ne.s32.totalorder %s672_s13, %s668_s12  ;;  %p43_p4 = scmp.eq.s32.totalorder %s723_s16, 0 }
   0xe   : > { %s739_s21 = scalar_select %p27_p1, %s676_s14, %s29_s19  }
   0xf   : > { %p38_p5 = por %p37_p2, %p36_p0  ;;  %p741_p6 = por %p43_p4, %p42_p3 }
  0x10   : > { %891 = sst [smem:[#allocation12_spill]] %s739_s21  ;;  %p118_p7 = scmp.eq.s32.totalorder %s723_s16, 7 }
  0x11   : > { %p124_p8 = scmp.eq.s32.totalorder %s438_s17, 7  ;;  %p482_p9 = scmp.lt.s32.totalorder %s680_s15, 8 }
  0x12   : > { %p747_p10 = por %p118_p7, %p36_p0  ;;  %s144_s25 = sand.u32 1, %s676_s14  }
  0x13   : > { %p751_p11 = por %p124_p8, %p42_p3  ;;  %s757_s26 = sshll.u32 %s680_s15, 1 }
  0x14   : > { %s761_s27 = sshll.u32 %s144_s25, 1  ;;  %p763_p12 = pnand %p482_p9, %p38_p5 }
  0x15   : > { %s163_s29 = sand.u32 1, %s680_s15   ;;  %s896_s1 = sld [smem:[#allocation13_spill]] }
  0x16   : > { %s167_s6 = scalar_lea.vmem [#allocation5], %s761_s27  ;;  %p447_p13 = scmp.ge.s32.totalorder %s680_s15, 1 }
  0x17   : > { %s175_s7 = sshll.u32 %s167_s6, 4  ;;  %s774_s9 = scalar_lea.sflag [#allocation6], %s163_s29  ;;  %s176_s7 = int_to_ptr.vmem [resolvable:$true] %s175_s7 }
  0x18   : > { %p524_p1 = pneg %p763_p12 }
  0x1b   : > { %s171_s5 = scalar_lea.hbm %s896_s1, %s757_s26  ;;  %s527_s20 = scalar_lea.hbm %s896_s1, 16 }
  0x1c   : > { %s173_s8 = sshll.u32 %s171_s5, 4  ;;  %s174_s8 = int_to_ptr.hbm [resolvable:$true] %s173_s8 }
  0x1d   : > { %s520_s10 = sshra.s32 %s174_s8, 4  ;;  %s521_s10 = int_to_ptr.hbm [resolvable:$true] %s520_s10 }
  0x1e   : > { %s522_s11 = scalar_lea.hbm %s521_s10, 2  ;;  %p528_p4 = scmp.lt.s32.totalorder %s521_s10, %s896_s1 }
  0x1f   : > { %p523_p0 = scmp.ne.s32.totalorder %s521_s10, %s522_s11  ;;  %p529_p5 = scmp.lt.s32.totalorder %s527_s20, %s522_s11 }
  0x21   : > { %p525_p2 = pnand %p524_p1, %p523_p0  ;;  %p530_p7 = por %p529_p5, %p528_p4 }
  0x23   : > { %p526_p3 = pneg %p525_p2 }
  0x25   : > { %p531_p8 = pnand %p530_p7, %p526_p3 }
  0x27   : > { %534 = shalt.err (!%p531_p8)
}
  0x28   : > { %474 = dma.hbm_to_vmem [thread:$0]  (!%p763_p12), %s174_s8, 32, %s176_s7, %s774_s9  }
  0x29   : > { %p199_p9 = scmp.lt.s32.totalorder %s680_s15, 9  ;;  %s152_s6 = scalar_lea.hbm %s886_s0, %s757_s26 }
  0x2a   : > { %s154_s11 = sshll.u32 %s152_s6, 4  ;;  %s148_s17 = scalar_lea.vmem [#allocation2], %s761_s27  ;;  %s155_s11 = int_to_ptr.hbm [resolvable:$true] %s154_s11 }
  0x2b   : > { %p797_p0 = pnand %p447_p13, %p199_p9  ;;  %s156_s19 = sshll.u32 %s148_s17, 4  ;;  %s157_s19 = int_to_ptr.vmem [resolvable:$true] %s156_s19 }
  0x2c   : > { %s145_s20 = scalar_lea.sflag [#allocation3], %s144_s25  ;;  %s550_s30 = sshra.s32 %s155_s11, 4  ;;  %s551_s30 = int_to_ptr.hbm [resolvable:$true] %s550_s30 }
  0x2d   : > { %s552_s7 = scalar_lea.hbm %s551_s30, 2  ;;  %s557_s29 = scalar_lea.hbm %s886_s0, 16 }
  0x2e   : > { %p553_p2 = scmp.ne.s32.totalorder %s551_s30, %s552_s7  ;;  %p558_p13 = scmp.lt.s32.totalorder %s551_s30, %s886_s0 }
  0x2f   : > { %p559_p5 = scmp.lt.s32.totalorder %s557_s29, %s552_s7 }
  0x30   : > { %p555_p3 = pnand %p553_p2, %p524_p1 }
  0x31   : > { %p560_p7 = por %p559_p5, %p558_p13 }
  0x32   : > { %p556_p4 = pneg %p555_p3 }
  0x34   : > { %p561_p8 = pnand %p560_p7, %p556_p4 }
  0x36   : > { %564 = shalt.err (!%p561_p8)
}
  0x37   : > { %471 = dma.hbm_to_vmem [thread:$0]  (!%p763_p12), %s155_s11, 32, %s157_s19, %s145_s20  }
  0x38   : > { %s190_s1 = scalar_lea.hbm %s888_s2, %s757_s26  ;;  %s186_s8 = scalar_lea.vmem [#allocation7], %s761_s27 }
  0x39   : > { %s194_s4 = sshll.u32 %s186_s8, 4  ;;  %s192_s21 = sshll.u32 %s190_s1, 4  ;;  %s195_s4 = int_to_ptr.vmem [resolvable:$true] %s194_s4  ;;  %s193_s21 = int_to_ptr.hbm [resolvable:$true] %s192_s21 }
  0x3a   : > { %s580_s30 = sshra.s32 %s193_s21, 4  ;;  %s587_s11 = scalar_lea.hbm %s888_s2, 16  ;;  %s581_s30 = int_to_ptr.hbm [resolvable:$true] %s580_s30 }
  0x3b   : > { %s582_s7 = scalar_lea.hbm %s581_s30, 2  ;;  %p588_p4 = scmp.lt.s32.totalorder %s581_s30, %s888_s2 }
  0x3c   : > { %p583_p9 = scmp.ne.s32.totalorder %s581_s30, %s582_s7  ;;  %p589_p13 = scmp.lt.s32.totalorder %s587_s11, %s582_s7 }
  0x3e   : > { %p585_p2 = pnand %p583_p9, %p524_p1  ;;  %p590_p5 = por %p589_p13, %p588_p4 }
  0x40   : > { %p586_p3 = pneg %p585_p2 }
  0x42   : > { %p591_p7 = pnand %p590_p5, %p586_p3 }
  0x44   : > { %594 = shalt.err (!%p591_p7)
}
  0x45   : > { %477 = dma.hbm_to_vmem [thread:$0]  (!%p763_p12), %s193_s21, 32, %s195_s4, %s774_s9  }
  0x46   : > { %203 = sbr.rel (%p797_p0) target bundleno = 298 (0x12a), region = 32  ;;  %s835_s1 = sand.u32 (!%p797_p0), 1, %s672_s13  }
  0x47   : > { %s838_s26 = sshll.u32 (!%p797_p0), %s835_s1, 1  ;;  %s206_s27 = scalar_lea.sflag (!%p797_p0), [#allocation3], %s835_s1 }
  0x48   : > { %s209_s6 = scalar_lea.vmem (!%p797_p0), [#allocation2], %s838_s26 }
  0x4b   : > { %655 = dma.done.wait (%p741_p6), %s206_s27, 32  }
  0x4c   : > { %657 = vsyncadd (%p741_p6), %s206_s27, 4294967264  ;;  %s215_s21 = sand.u32 1, %s723_s16   ;;  %s219_s9 = scalar_lea.vmem [#allocation5], %s838_s26 }
  0x4d   : > { %s216_s28 = scalar_lea.sflag [#allocation6], %s215_s21 }
  0x4e   : > { %659 = dma.done.wait (%p741_p6), %s216_s28, 64  }
  0x4f   : > { %661 = vsyncadd (%p741_p6), %s216_s28, 4294967232  ;;  %v263_v0 = vld [vmem:[%s209_s6] sm:$0x3]  ;;  %v264_v5 = vld [vmem:[%s219_s9] sm:$0x3]  ;;  %s229_s10 = scalar_lea.vmem [#allocation7], %s838_s26  ;;  %v302_v34 = vlaneseq }
  0x50   : > { %v269_v1 = vand.u32 2147483647, %v263_v0  ;;  %v265_v7 = vld [vmem:[%s229_s10] sm:$0x3]  ;;  %v266_v8 = vmax.f32 %v263_v0, 0.0  ;;  %v267_v9 = vmul.f32 %v264_v5, %v263_v0  ;;  %vm281_vm0 = vcmask 1041408  }
  0x51   : > { %v277_v10 = vsub.f32 %v265_v7, %v264_v5  ;;  %s453_s22 = sshll.u32 %s723_s16, 1  ;;  %v303_v35 = vshrl.u32 %v302_v34, 7  ;;  %s262_s4 = scalar_lea.vmem [#allocation8], %s838_s26 }
  0x52   : > { %v270_v2 = vsub.f32 0.0, %v269_v1  ;;  %v268_v11 = vsub.f32 %v266_v8, %v267_v9  ;;  %s320_s8 = scalar_lea.hbm %s889_s3, %s453_s22  ;;  %s322_s30 = sshll.u32 %s262_s4, 4  ;;  %s323_s30 = int_to_ptr.vmem [resolvable:$true] %s322_s30 }
  0x53   : > { %v278_v12 = vand.u32 2147483647, %v277_v10  ;;  %s324_s29 = sshll.u32 %s320_s8, 4  ;;  %vm304_vm1 = vcmp.eq.s32.totalorder %v303_v35, 0  ;;  %s310_s11 = scalar_lea.sflag [#allocation4], %s835_s1  ;;  %s325_s29 = int_to_ptr.hbm [resolvable:$true] %s324_s29 }
  0x54   : > { %v271_v3 = vmul.f32 1.442695, %v270_v2  ;;  %s624_s16 = sshra.s32 %s325_s29, 4  ;;  %s630_s27 = scalar_lea.hbm %s889_s3, 16  ;;  %s625_s16 = int_to_ptr.hbm [resolvable:$true] %s624_s16 }
  0x55   : > { %v279_v16 = vmul.f32 4.0, %v278_v12  ;;  %s626_s19 = scalar_lea.hbm %s625_s16, 2  ;;  %p631_p0 = scmp.lt.s32.totalorder %s625_s16, %s889_s3 }
  0x56   : > { %516 = vpow2.f32 %v271_v3  ;;  %p627_p6 = scmp.ne.s32.totalorder %s625_s16, %s626_s19  ;;  %p632_p8 = scmp.lt.s32.totalorder %s630_s27, %s626_s19 }
  0x57   : > { %v280_v18 = vadd.f32 1.0, %v279_v16 }
  0x58   : > { %p628_p12 = pnand %p627_p6, %p747_p10  ;;  %p633_p9 = por %p632_p8, %p631_p0 }
  0x59   : > { %v292_v19 = vsel %vm281_vm0, %v280_v18, 0.0 }
  0x5a   : > { %p629_p1 = pneg %p628_p12 }
  0x5c   : > { %v517_v4 = vpop.eup %516  ;;  %p634_p2 = pnand %p633_p9, %p629_p1 }
  0x5d   : > { %v273_v6 = vadd.f32 1.0, %v517_v4 }
  0x5f   : > { %518 = vlog2.f32 %v273_v6 }
  0x65   : > { %v519_v13 = vpop.eup %518 }
  0x66   : > { %v275_v14 = vmul.f32 0.6931472, %v519_v13 }
  0x68   : > { %v276_v15 = vadd.f32 %v275_v14, %v268_v11 }
  0x6a   : > { %v282_v17 = vsel %vm281_vm0, %v276_v15, 0.0 }
  0x6b   : > { %283 = vadd.xlane.f32.xlu0 %v282_v17 }
  0x73   : > { %293 = vadd.xlane.f32.xlu0 %v292_v19 }
  0xde   : > { %v284_v20 = vpop.xlane.xlu0 %283 }
  0xdf   : > { %v285_v21 = vrot.slane %v284_v20, 4 }
  0xe1   : > { %v286_v22 = vadd.f32 %v285_v21, %v284_v20 }
  0xe3   : > { %v287_v23 = vrot.slane %v286_v22, 2 }
  0xe5   : > { %v288_v24 = vadd.f32 %v287_v23, %v286_v22 }
  0xe6   : > { %v294_v25 = vpop.xlane.xlu0 %293 }
  0xe7   : > { %v295_v26 = vrot.slane %v294_v25, 4  ;;  %v289_v27 = vrot.slane %v288_v24, 1 }
  0xe9   : > { %v296_v28 = vadd.f32 %v295_v26, %v294_v25  ;;  %v290_v29 = vadd.f32 %v289_v27, %v288_v24 }
  0xeb   : > { %v297_v30 = vrot.slane %v296_v28, 2  ;;  %456 = vpush %v290_v29 }
  0xed   : > { %v298_v31 = vadd.f32 %v297_v30, %v296_v28 }
  0xef   : > { %v299_v32 = vrot.slane %v298_v31, 1 }
  0xf1   : > { %v300_v33 = vadd.f32 %v299_v32, %v298_v31 }
  0xf3   : > { %458 = vpush %v300_v33 }
 0x11c   : > { %s457_s7 = spop %456 }
 0x11d   : > { %v305_v36 = vstv %s457_s7 }
 0x124   : > { %s459_s5 = spop %458 }
 0x125   : > { %v306_v37 = vstv %s459_s5 }
 0x126   : > { %v307_v38 = vsel %vm304_vm1, %v305_v36, %v306_v37 }
 0x127   : > { %308 = vst [vmem:[%s262_s4] sm:$0x3] %v307_v38 }
 0x128   : > { %637 = shalt.err (!%p634_p2)
}
 0x129   : > { %466 = dma.vmem_to_hbm [thread:$0]  (%p747_p10), %s323_s30, 32, %s325_s29, %s310_s11  }
 0x12a PF: > { %p483_p3 = scmp.ge.s32.totalorder %s680_s15, 2  ;;  %s336_s1 = sand.u32 1, %s668_s12  }
 0x12b   : > { %s337_s28 = scalar_lea.sflag [#allocation4], %s336_s1 }
 0x12c   : > { %p479_p4 = pnand %p483_p3, %p751_p11 }
 0x12e   : > { %p480_p13 = pneg %p479_p4 }
 0x130   : > { %663 = dma.done.wait (%p480_p13), %s337_s28, 32  }
 0x131   : > { %665 = vsyncadd (%p480_p13), %s337_s28, 4294967264  ;;  %s898_s9 = sld [smem:[#allocation12_spill]]  ;;  %p19_p5 = scmp.ge.s32.totalorder %s727_s18, 10  }
 0x132   : > { %s899_s12 = smov %s672_s13  ;;  %s900_s13 = smov %s676_s14 }
 0x133   : > { %s902_s15 = smov %s727_s18  ;;  %21 = sbr.rel (!%p19_p5) target bundleno = 9 (0x9), region = 101 }
 0x137   : > { %s901_s14 = smov %s898_s9 }
 0x138   :  { %343 = vsyncpa [#allocation3], 1 }
 0x139   :  { %345 = vsyncpa [#allocation3 + $0x1], 1 }
 0x13a   :  { %346 = vsyncpa [#allocation6], 1 }
 0x13b   :  { %348 = vsyncpa [#allocation6 + $0x1], 1 }
 0x13c   :  { %349 = vsyncpa [#allocation4], 1 }
 0x13d   :  { %351 = vsyncpa [#allocation4 + $0x1], 1 }

</bundles_post_ra>
